<compile_context>
chip_gen: v6e
topology: v6e:2x2x1
jax: 0.10.0
libtpu: 0.0.40
codegen_flags: <defaults>
</compile_context>

<pallas_src>
import jax
import jax.numpy as jnp
from jax.experimental import pallas as pl
from jax.experimental.pallas import tpu as pltpu

# ------------------------- config (opt dict) ---------------------------------
FEAT_NUM = 100        # opt['feat_num']
FIELD_NUM = 8         # opt['field_num']
LATENT_DIM = 16       # opt['latent_dim']
MLP_DIMS = (64, 32)   # opt['mlp_dims']
SCALING = 2.0         # opt['scaling']
TEMP = 1.0            # self.temp
DNN_DIM = FIELD_NUM * LATENT_DIM            # 128 (fits lanes exactly)
BATCH = 8

# ----------------------- packed parameter layout ------------------------------
LANE = 128
ROWS = 128                                   # padded contraction dim for all GEMMs
C_W1 = 0 * LANE                              # [   0: 128): layer1 (128 ->  64, padded)
C_W2 = 1 * LANE                              # [ 128: 256): layer2 ( 64 ->  32, padded)
C_HD = 2 * LANE                              # [ 256: 768): fused mask heads
HEAD_COLS = 4 * LANE                         #   fmask1..3 (field-replicated) + packed emask
C_EM = C_HD + 3 * LANE                       # [ 640: 768): emask1|emask2|emask3 (3x16 lanes)
C_S = C_HD + HEAD_COLS                       # [ 768:1152): field-sum selectors S1,S2,S3
C_G = C_S + 3 * LANE                         # [1152:1280): group-sum * 0.5*scaling^2
TOTAL_COLS = C_G + LANE                      # 1280
BIAS_COLS = C_S                              # 768 (biases only for W1, W2, heads)


# ------------------------------ Pallas kernel --------------------------------
def _fm_kernel(emb_ref, w_ref, b_ref, out_ref):
    f32, bf16 = jnp.float32, jnp.bfloat16

    x_bf = emb_ref[...]                       # (tb, 128) bf16, flat (field, latent)
    x = x_bf.astype(f32)

    w1 = w_ref[:, C_W1:C_W1 + LANE]           # (128,128) bf16
    w2 = w_ref[:, C_W2:C_W2 + LANE]
    wh = w_ref[:, C_HD:C_HD + HEAD_COLS]      # (128,512) bf16
    b1 = b_ref[:, C_W1:C_W1 + LANE]           # (1,128) f32
    b2 = b_ref[:, C_W2:C_W2 + LANE]
    bh = b_ref[:, C_HD:C_HD + HEAD_COLS]

    # ---- hypernet MLP + fused mask-head GEMM (lane-dense, bf16 MXU) ----------
    h1 = jnp.maximum(jnp.dot(x_bf, w1, preferred_element_type=f32) + b1, 0.0)
    h2 = jnp.maximum(
        jnp.dot(h1.astype(bf16), w2, preferred_element_type=f32) + b2, 0.0)
    pre = jnp.dot(h2.astype(bf16), wh, preferred_element_type=f32) + bh
    if TEMP != 1.0:                           # folded at trace time (temp == 1.0)
        pre = TEMP * pre
    heads = jax.nn.sigmoid(pre)               # (tb, 512)

    # fmask_d is field-replicated to the flat layout (col k -> field k // 16)
    fm1 = heads[:, 0 * LANE:1 * LANE]
    fm2 = heads[:, 1 * LANE:2 * LANE]
    fm3 = heads[:, 2 * LANE:3 * LANE]
    # combined emask: domain d occupies lanes [16d:16d+16); lanes >= 48 are
    # sigmoid(0)=0.5 padding, harmless because A/C are exactly 0 there.
    em = heads[:, 3 * LANE:4 * LANE]

    # ---- FactorizationMachine, hoisted / shared-lane layout ------------------
    #   A_d[b,e] = sum_f embed*fmask_d   -> lanes [16d:16d+16) via S_d
    #   C_d[b,e] = sum_f embed^2*fmask_d^2
    #   y_d = 0.5*s^2 * sum_e emask_d^2 * (A_d^2 - C_d)
    x2 = x * x
    t1 = (x * fm1).astype(bf16); u1 = (x2 * (fm1 * fm1)).astype(bf16)
    t2 = (x * fm2).astype(bf16); u2 = (x2 * (fm2 * fm2)).astype(bf16)
    t3 = (x * fm3).astype(bf16); u3 = (x2 * (fm3 * fm3)).astype(bf16)

    s1 = w_ref[:, C_S + 0 * LANE:C_S + 1 * LANE]   # (128,128) bf16 0/1 selectors
    s2 = w_ref[:, C_S + 1 * LANE:C_S + 2 * LANE]
    s3 = w_ref[:, C_S + 2 * LANE:C_S + 3 * LANE]

    a = (jnp.dot(t1, s1, preferred_element_type=f32)
         + jnp.dot(t2, s2, preferred_element_type=f32)
         + jnp.dot(t3, s3, preferred_element_type=f32))      # (tb,128) A1|A2|A3
    c = (jnp.dot(u1, s1, preferred_element_type=f32)
         + jnp.dot(u2, s2, preferred_element_type=f32)
         + jnp.dot(u3, s3, preferred_element_type=f32))      # (tb,128) C1|C2|C3

    ix = (em * em * (a * a - c)).astype(bf16)                # lanes >= 48 exactly 0

    # group-sum matmul (0.5*scaling^2 folded in host-side) -> lane-dense output:
    # domain d in lane d, zeros elsewhere; sliced to (B,3) outside.
    g = w_ref[:, C_G:C_G + LANE]
    out_ref[...] = jnp.dot(ix, g, preferred_element_type=f32)


# ------------------------------- wrapper --------------------------------------
def _round_up(x, m):
    return (x + m - 1) // m * m


def _pick_tile(b):
    """Batch tile: %8, capped at 512; >=2 grid steps when b>=16 (v7x dual TC)."""
    bp8 = max(_round_up(b, 8), 8)
    if bp8 >= 16:
        return min(512, _round_up(-(-bp8 // 2), 8))
    return bp8


def fm_forward(embed_flat, w_packed, b_packed):
    """embed_flat: (B, 128) flat (field, latent). Returns (B, 3) f32."""
    b = embed_flat.shape[0]
    tb = _pick_tile(b)
    bp = _round_up(max(b, tb), tb)
    x = embed_flat.astype(jnp.bfloat16)
    if bp != b:                                # pad remainder tile instead of asserting
        x = jnp.pad(x, ((0, bp - b), (0, 0)))

    out = pl.pallas_call(
        _fm_kernel,
        out_shape=jax.ShapeDtypeStruct((bp, LANE), jnp.float32),
        grid=(bp // tb,),
        in_specs=[
            pl.BlockSpec((tb, DNN_DIM), lambda i: (i, 0)),
            pl.BlockSpec((ROWS, TOTAL_COLS), lambda i: (0, 0)),
            pl.BlockSpec((1, BIAS_COLS), lambda i: (0, 0)),
        ],
        out_specs=pl.BlockSpec((tb, LANE), lambda i: (i, 0)),
        compiler_params=pltpu.CompilerParams(
            dimension_semantics=("parallel",)),
    )(x, w_packed, b_packed)
    return out[:b, :3]


# ------------------------ host-side parameter packing -------------------------
def pack_params(params):
    (w1, b1, w2, b2,
     wf1, bf1, wf2, bf2, wf3, bf3,
     we1, be1, we2, be2, we3, be3) = params
    h1, h2 = MLP_DIMS
    e = LATENT_DIM
    assert DNN_DIM == LANE and h1 <= LANE and h2 <= LANE and 3 * e <= LANE

    wp = jnp.zeros((ROWS, TOTAL_COLS), jnp.float32)
    bp = jnp.zeros((1, BIAS_COLS), jnp.float32)

    wp = wp.at[:DNN_DIM, C_W1:C_W1 + h1].set(w1)
    bp = bp.at[0, C_W1:C_W1 + h1].set(b1.reshape(-1))
    wp = wp.at[:h1, C_W2:C_W2 + h2].set(w2)
    bp = bp.at[0, C_W2:C_W2 + h2].set(b2.reshape(-1))

    off = C_HD
    for wf, bf in ((wf1, bf1), (wf2, bf2), (wf3, bf3)):   # replicate fmask to flat layout
        wp = wp.at[:h2, off:off + LANE].set(jnp.repeat(wf, e, axis=1))
        bp = bp.at[0, off:off + LANE].set(jnp.repeat(bf.reshape(-1), e))
        off += LANE
    for d, (we, be) in enumerate(((we1, be1), (we2, be2), (we3, be3))):
        c0 = C_EM + d * e                                  # emasks share one 128-lane block
        wp = wp.at[:h2, c0:c0 + e].set(we)
        bp = bp.at[0, c0:c0 + e].set(be.reshape(-1))

    # field-sum selectors: S_d[k, 16*d + k%16] = 1  (exact in bf16)
    k = jnp.arange(DNN_DIM)
    lanes = jnp.arange(LANE)
    for d in range(3):
        sel = (lanes[None, :] == (d * e + (k % e))[:, None]).astype(jnp.float32)
        wp = wp.at[:DNN_DIM, C_S + d * LANE:C_S + (d + 1) * LANE].set(sel)

    # group-sum with 0.5*scaling^2 folded in: G[k, k//16] = 2.0 for k < 48
    # (2.0 is exact in bf16; only lanes carrying real A/C data are summed).
    half_s2 = 0.5 * SCALING * SCALING
    gsel = ((lanes[None, :] == (k // e)[:, None]) & (k[:, None] < 3 * e))
    wp = wp.at[:DNN_DIM, C_G:C_G + LANE].set(gsel.astype(jnp.float32) * half_s2)

    return wp.astype(jnp.bfloat16), bp


# ---------------------------- pure-JAX reference ------------------------------
def fm_forward_ref(embed3d, params):
    (w1, b1, w2, b2,
     wf1, bf1, wf2, bf2, wf3, bf3,
     we1, be1, we2, be2, we3, be3) = params
    bsz, f, e = embed3d.shape
    x = embed3d.reshape(bsz, f * e)

    def bdot(a, w):  # mirrors the kernel's bf16 MXU operands, f32 accumulation
        return jnp.dot(a.astype(jnp.bfloat16), w.astype(jnp.bfloat16),
                       preferred_element_type=jnp.float32)

    h = jnp.maximum(bdot(x, w1) + b1, 0.0)
    h = jnp.maximum(bdot(h, w2) + b2, 0.0)
    sig = jax.nn.sigmoid

    def fm(fw, fb, ew, eb):   # FactorizationMachine(reduce_sum=True), f32
        fmask = sig(TEMP * (bdot(h, fw) + fb))
        emask = sig(TEMP * (bdot(h, ew) + eb))
        m = embed3d * SCALING * fmask[:, :, None] * emask[:, None, :]
        s = jnp.sum(m, axis=1)
        return 0.5 * jnp.sum(s * s - jnp.sum(m * m, axis=1), axis=1)

    return jnp.stack([fm(wf1, bf1, we1, be1),
                      fm(wf2, bf2, we2, be2),
                      fm(wf3, bf3, we3, be3)], axis=1)


# --------------------------------- main ---------------------------------------
def init_params(key):
    ks = jax.random.split(key, 9)
    h1, h2 = MLP_DIMS

    def lin(k, fan_in, fan_out):
        kw, kb = jax.random.split(k)
        bound = 1.0 / jnp.sqrt(fan_in)
        w = jax.random.uniform(kw, (fan_in, fan_out), jnp.float32, -bound, bound)
        b = jax.random.uniform(kb, (1, fan_out), jnp.float32, -bound, bound)
        return w, b

    table = jax.random.normal(ks[0], (FEAT_NUM, LATENT_DIM), jnp.float32) * 0.1
    w1, b1 = lin(ks[1], DNN_DIM, h1)
    w2, b2 = lin(ks[2], h1, h2)
    wf1, bf1 = lin(ks[3], h2, FIELD_NUM)
    wf2, bf2 = lin(ks[4], h2, FIELD_NUM)
    wf3, bf3 = lin(ks[5], h2, FIELD_NUM)
    we1, be1 = lin(ks[6], h2, LATENT_DIM)
    we2, be2 = lin(ks[7], h2, LATENT_DIM)
    we3, be3 = lin(ks[8], h2, LATENT_DIM)
    return table, (w1, b1, w2, b2,
                   wf1, bf1, wf2, bf2, wf3, bf3,
                   we1, be1, we2, be2, we3, be3)


if __name__ == "__main__":
    key = jax.random.PRNGKey(0)
    k_param, k_x = jax.random.split(key)

    table, params = init_params(k_param)
    w_packed, b_packed = pack_params(params)

    # x: integer feature ids of shape (batch, field_num)
    x = jax.random.randint(k_x, (BATCH, FIELD_NUM), 0, FEAT_NUM, dtype=jnp.int32)

    # Embedding lookup (nn.Embedding gather) stays in XLA; activations are
    # rounded to bf16 once so kernel (bf16 stream) and reference agree exactly
    # on the embedding values.
    # TODO(synk): fold the gather into the kernel (table in VMEM + SMEM indices)
    # if the table ever outgrows a cheap XLA gather.
    embed3d = jnp.take(table, x, axis=0)                         # (B, F, E) f32
    embed3d = embed3d.astype(jnp.bfloat16).astype(jnp.float32)
    embed_flat = embed3d.reshape(BATCH, DNN_DIM)                 # torch .view order

    out = fm_forward(embed_flat, w_packed, b_packed)
    out = jax.block_until_ready(out)

    ref = fm_forward_ref(embed3d, params)
    assert out.shape == (BATCH, 3)
    # bf16 MXU operands in the FM tail (t/u, ix) vs. the f32 reference tail.
    assert jnp.allclose(out, ref, atol=1e-2, rtol=2e-2), (out, ref)

    # TODO(synk): fmask*/emask*/mask_rate_list bookkeeping and the `ticket`
    # hard-threshold branch are host-side Python statistics; omitted.
    print("KERNEL_OK")
</pallas_src>

<mosaic_0001>
module attributes {stable_mosaic.version = 11 : i64} {
  func.func @_fm_kernel(%arg0: i32, %arg1: memref<8x128xbf16, #tpu.memory_space<vmem>>, %arg2: memref<128x1280xbf16, #tpu.memory_space<vmem>>, %arg3: memref<1x768xf32, #tpu.memory_space<vmem>>, %arg4: memref<8x128xf32, #tpu.memory_space<vmem>>) attributes {dimension_semantics = [#tpu.dimension_semantics<parallel>], iteration_bounds = array<i64: 1>, scalar_prefetch = 0 : i64, scratch_operands = 0 : i64, tpu.core_type = #tpu.core_type<tc>, window_params = [{transform_indices = @transform_0, window_bounds = array<i64: 8, 128>}, {pipeline_mode = #tpu.pipeline_mode<synchronous>, transform_indices = @transform_1, window_bounds = array<i64: 128, 1280>}, {pipeline_mode = #tpu.pipeline_mode<synchronous>, transform_indices = @transform_2, window_bounds = array<i64: 1, 768>}, {transform_indices = @transform_3, window_bounds = array<i64: 8, 128>}]} {
    %c0 = arith.constant 0 : index
    %c0_0 = arith.constant 0 : index
    %0 = vector.load %arg1[%c0, %c0_0] : memref<8x128xbf16, #tpu.memory_space<vmem>>, vector<8x128xbf16>
    %1 = arith.extf %0 : vector<8x128xbf16> to vector<8x128xf32>
    %c0_1 = arith.constant 0 : index
    %c0_2 = arith.constant 0 : index
    %2 = vector.load %arg2[%c0_1, %c0_2] : memref<128x1280xbf16, #tpu.memory_space<vmem>>, vector<128x128xbf16>
    %c0_3 = arith.constant 0 : index
    %c128 = arith.constant 128 : index
    %3 = vector.load %arg2[%c0_3, %c128] : memref<128x1280xbf16, #tpu.memory_space<vmem>>, vector<128x128xbf16>
    %c0_4 = arith.constant 0 : index
    %c256 = arith.constant 256 : index
    %4 = vector.load %arg2[%c0_4, %c256] : memref<128x1280xbf16, #tpu.memory_space<vmem>>, vector<128x512xbf16>
    %c0_5 = arith.constant 0 : index
    %c0_6 = arith.constant 0 : index
    %5 = vector.load %arg3[%c0_5, %c0_6] : memref<1x768xf32, #tpu.memory_space<vmem>>, vector<1x128xf32>
    %c0_7 = arith.constant 0 : index
    %c128_8 = arith.constant 128 : index
    %6 = vector.load %arg3[%c0_7, %c128_8] : memref<1x768xf32, #tpu.memory_space<vmem>>, vector<1x128xf32>
    %c0_9 = arith.constant 0 : index
    %c256_10 = arith.constant 256 : index
    %7 = vector.load %arg3[%c0_9, %c256_10] : memref<1x768xf32, #tpu.memory_space<vmem>>, vector<1x512xf32>
    %cst = arith.constant dense<0.000000e+00> : vector<8x128xf32>
    %8 = tpu.matmul %0, %2, %cst {dimension_numbers = #tpu.dot_dimension_numbers<[1], [0], [0], [1], [0, 0, 1, 1], [], []>} : vector<8x128xbf16>, vector<128x128xbf16>, vector<8x128xf32> -> vector<8x128xf32>
    %9 = vector.broadcast %5 : vector<1x128xf32> to vector<8x128xf32>
    %10 = arith.addf %8, %9 : vector<8x128xf32>
    %cst_11 = arith.constant 0.000000e+00 : f32
    %11 = vector.broadcast %cst_11 : f32 to vector<8x128xf32>
    %12 = arith.maximumf %10, %11 : vector<8x128xf32>
    %13 = arith.truncf %12 : vector<8x128xf32> to vector<8x128xbf16>
    %cst_12 = arith.constant dense<0.000000e+00> : vector<8x128xf32>
    %14 = tpu.matmul %13, %3, %cst_12 {dimension_numbers = #tpu.dot_dimension_numbers<[1], [0], [0], [1], [0, 0, 1, 1], [], []>} : vector<8x128xbf16>, vector<128x128xbf16>, vector<8x128xf32> -> vector<8x128xf32>
    %15 = vector.broadcast %6 : vector<1x128xf32> to vector<8x128xf32>
    %16 = arith.addf %14, %15 : vector<8x128xf32>
    %cst_13 = arith.constant 0.000000e+00 : f32
    %17 = vector.broadcast %cst_13 : f32 to vector<8x128xf32>
    %18 = arith.maximumf %16, %17 : vector<8x128xf32>
    %19 = arith.truncf %18 : vector<8x128xf32> to vector<8x128xbf16>
    %cst_14 = arith.constant dense<0.000000e+00> : vector<8x512xf32>
    %20 = tpu.matmul %19, %4, %cst_14 {dimension_numbers = #tpu.dot_dimension_numbers<[1], [0], [0], [1], [0, 0, 1, 1], [], []>} : vector<8x128xbf16>, vector<128x512xbf16>, vector<8x512xf32> -> vector<8x512xf32>
    %21 = vector.broadcast %7 : vector<1x512xf32> to vector<8x512xf32>
    %22 = arith.addf %20, %21 : vector<8x512xf32>
    %23 = arith.negf %22 : vector<8x512xf32>
    %24 = math.exp %23 : vector<8x512xf32>
    %cst_15 = arith.constant 1.000000e+00 : f32
    %25 = vector.broadcast %cst_15 : f32 to vector<8x512xf32>
    %26 = arith.addf %25, %24 : vector<8x512xf32>
    %27 = arith.divf %25, %26 : vector<8x512xf32>
    %28 = vector.extract_strided_slice %27 {offsets = [0, 0], sizes = [8, 128], strides = [1, 1]} : vector<8x512xf32> to vector<8x128xf32>
    %29 = vector.extract_strided_slice %27 {offsets = [0, 128], sizes = [8, 128], strides = [1, 1]} : vector<8x512xf32> to vector<8x128xf32>
    %30 = vector.extract_strided_slice %27 {offsets = [0, 256], sizes = [8, 128], strides = [1, 1]} : vector<8x512xf32> to vector<8x128xf32>
    %31 = vector.extract_strided_slice %27 {offsets = [0, 384], sizes = [8, 128], strides = [1, 1]} : vector<8x512xf32> to vector<8x128xf32>
    %32 = arith.mulf %1, %1 : vector<8x128xf32>
    %33 = arith.mulf %1, %28 : vector<8x128xf32>
    %34 = arith.truncf %33 : vector<8x128xf32> to vector<8x128xbf16>
    %35 = arith.mulf %28, %28 : vector<8x128xf32>
    %36 = arith.mulf %32, %35 : vector<8x128xf32>
    %37 = arith.truncf %36 : vector<8x128xf32> to vector<8x128xbf16>
    %38 = arith.mulf %1, %29 : vector<8x128xf32>
    %39 = arith.truncf %38 : vector<8x128xf32> to vector<8x128xbf16>
    %40 = arith.mulf %29, %29 : vector<8x128xf32>
    %41 = arith.mulf %32, %40 : vector<8x128xf32>
    %42 = arith.truncf %41 : vector<8x128xf32> to vector<8x128xbf16>
    %43 = arith.mulf %1, %30 : vector<8x128xf32>
    %44 = arith.truncf %43 : vector<8x128xf32> to vector<8x128xbf16>
    %45 = arith.mulf %30, %30 : vector<8x128xf32>
    %46 = arith.mulf %32, %45 : vector<8x128xf32>
    %47 = arith.truncf %46 : vector<8x128xf32> to vector<8x128xbf16>
    %c0_16 = arith.constant 0 : index
    %c768 = arith.constant 768 : index
    %48 = vector.load %arg2[%c0_16, %c768] : memref<128x1280xbf16, #tpu.memory_space<vmem>>, vector<128x128xbf16>
    %c0_17 = arith.constant 0 : index
    %c896 = arith.constant 896 : index
    %49 = vector.load %arg2[%c0_17, %c896] : memref<128x1280xbf16, #tpu.memory_space<vmem>>, vector<128x128xbf16>
    %c0_18 = arith.constant 0 : index
    %c1024 = arith.constant 1024 : index
    %50 = vector.load %arg2[%c0_18, %c1024] : memref<128x1280xbf16, #tpu.memory_space<vmem>>, vector<128x128xbf16>
    %cst_19 = arith.constant dense<0.000000e+00> : vector<8x128xf32>
    %51 = tpu.matmul %34, %48, %cst_19 {dimension_numbers = #tpu.dot_dimension_numbers<[1], [0], [0], [1], [0, 0, 1, 1], [], []>} : vector<8x128xbf16>, vector<128x128xbf16>, vector<8x128xf32> -> vector<8x128xf32>
    %cst_20 = arith.constant dense<0.000000e+00> : vector<8x128xf32>
    %52 = tpu.matmul %39, %49, %cst_20 {dimension_numbers = #tpu.dot_dimension_numbers<[1], [0], [0], [1], [0, 0, 1, 1], [], []>} : vector<8x128xbf16>, vector<128x128xbf16>, vector<8x128xf32> -> vector<8x128xf32>
    %53 = arith.addf %51, %52 : vector<8x128xf32>
    %cst_21 = arith.constant dense<0.000000e+00> : vector<8x128xf32>
    %54 = tpu.matmul %44, %50, %cst_21 {dimension_numbers = #tpu.dot_dimension_numbers<[1], [0], [0], [1], [0, 0, 1, 1], [], []>} : vector<8x128xbf16>, vector<128x128xbf16>, vector<8x128xf32> -> vector<8x128xf32>
    %55 = arith.addf %53, %54 : vector<8x128xf32>
    %cst_22 = arith.constant dense<0.000000e+00> : vector<8x128xf32>
    %56 = tpu.matmul %37, %48, %cst_22 {dimension_numbers = #tpu.dot_dimension_numbers<[1], [0], [0], [1], [0, 0, 1, 1], [], []>} : vector<8x128xbf16>, vector<128x128xbf16>, vector<8x128xf32> -> vector<8x128xf32>
    %cst_23 = arith.constant dense<0.000000e+00> : vector<8x128xf32>
    %57 = tpu.matmul %42, %49, %cst_23 {dimension_numbers = #tpu.dot_dimension_numbers<[1], [0], [0], [1], [0, 0, 1, 1], [], []>} : vector<8x128xbf16>, vector<128x128xbf16>, vector<8x128xf32> -> vector<8x128xf32>
    %58 = arith.addf %56, %57 : vector<8x128xf32>
    %cst_24 = arith.constant dense<0.000000e+00> : vector<8x128xf32>
    %59 = tpu.matmul %47, %50, %cst_24 {dimension_numbers = #tpu.dot_dimension_numbers<[1], [0], [0], [1], [0, 0, 1, 1], [], []>} : vector<8x128xbf16>, vector<128x128xbf16>, vector<8x128xf32> -> vector<8x128xf32>
    %60 = arith.addf %58, %59 : vector<8x128xf32>
    %61 = arith.mulf %31, %31 : vector<8x128xf32>
    %62 = arith.mulf %55, %55 : vector<8x128xf32>
    %63 = arith.subf %62, %60 : vector<8x128xf32>
    %64 = arith.mulf %61, %63 : vector<8x128xf32>
    %65 = arith.truncf %64 : vector<8x128xf32> to vector<8x128xbf16>
    %c0_25 = arith.constant 0 : index
    %c1152 = arith.constant 1152 : index
    %66 = vector.load %arg2[%c0_25, %c1152] : memref<128x1280xbf16, #tpu.memory_space<vmem>>, vector<128x128xbf16>
    %cst_26 = arith.constant dense<0.000000e+00> : vector<8x128xf32>
    %67 = tpu.matmul %65, %66, %cst_26 {dimension_numbers = #tpu.dot_dimension_numbers<[1], [0], [0], [1], [0, 0, 1, 1], [], []>} : vector<8x128xbf16>, vector<128x128xbf16>, vector<8x128xf32> -> vector<8x128xf32>
    %c0_27 = arith.constant 0 : index
    %c0_28 = arith.constant 0 : index
    %68 = vector.load %arg4[%c0_27, %c0_28] : memref<8x128xf32, #tpu.memory_space<vmem>>, vector<8x128xf32>
    tpu.vector_store %arg4[%c0_27, %c0_28], %67 {strides = array<i32>} : memref<8x128xf32, #tpu.memory_space<vmem>>, vector<8x128xf32>,
    return
  }
  func.func @transform_0(%arg0: i32) -> (i32, i32) {
    %c0_i32 = arith.constant 0 : i32
    %c0_i32_0 = arith.constant 0 : i32
    return %arg0, %c0_i32 : i32, i32
  }
  func.func @transform_1(%arg0: i32) -> (i32, i32) {
    %c0_i32 = arith.constant 0 : i32
    %c0_i32_0 = arith.constant 0 : i32
    %c0_i32_1 = arith.constant 0 : i32
    return %c0_i32, %c0_i32_0 : i32, i32
  }
  func.func @transform_2(%arg0: i32) -> (i32, i32) {
    %c0_i32 = arith.constant 0 : i32
    %c0_i32_0 = arith.constant 0 : i32
    %c0_i32_1 = arith.constant 0 : i32
    return %c0_i32, %c0_i32_0 : i32, i32
  }
  func.func @transform_3(%arg0: i32) -> (i32, i32) {
    %c0_i32 = arith.constant 0 : i32
    %c0_i32_0 = arith.constant 0 : i32
    return %arg0, %c0_i32 : i32, i32
  }
}

</mosaic_0001>

<bundles_post_ra>
// kernel: tpu_custom_call.1
= control target key start
LH: loop header
LB: loop body
LE: loop exit
PB: predicated region body
PF: predicated region fallthrough
CT: control target
= control target key end

     0   :  { %8 = vsyncpa [#allocation3], 0  ;;  %s1954_s0 = inlined_call_operand.hbm [shape: bf16[8,128], index: 0, kind: input, shape index: {}]   ;;  %s1955_s1 = inlined_call_operand.hbm [shape: bf16[128,1280], index: 1, kind: input, shape index: {}]   ;;  %s1956_s2 = inlined_call_operand.hbm [shape: f32[1,768], index: 2, kind: input, shape index: {}]   ;;  %s1957_s3 = inlined_call_operand.hbm [shape: f32[8,128], index: 3, kind: output, shape index: {}]  }
   0x1   :  { %9 = vsyncpa [#allocation6], 0 }
   0x2   :  { %10 = vsyncpa [#allocation4], 0  ;;  %s1731_s12 = smov [#allocation5]  }
   0x3   :  { %s26_s13 = sshll.u32 %s1731_s12, 4  ;;  %s27_s13 = int_to_ptr.vmem [resolvable:$true] %s26_s13 }
   0x4   :  { %s1653_s14 = scalar_lea.vmem %s27_s13, 10240  ;;  %p1658_p1 = scmp.lt.s32.totalorder %s27_s13, %s27_s13 }
   0x5   :  { %p1654_p0 = scmp.ne.s32.totalorder %s27_s13, %s1653_s14  ;;  %p1659_p2 = scmp.lt.s32.totalorder %s1653_s14, %s1653_s14 }
   0x7   :  { %p1660_p3 = por %p1659_p2, %p1658_p1 }
   0x9   :  { %p1661_p4 = pnand %p1660_p3, %p1654_p0 }
   0xb   :  { %1664 = shalt.err (!%p1661_p4)
}
   0xc   :  { %s1732_s15 = smov 640   ;;  %s1733_s16 = smov 40  }
   0xd   :  { %32 = dma.hbm_to_vmem [thread:$0]  %s1955_s1, 10240, %s27_s13, [#allocation6], %s1732_s15, %s1732_s15, %s1733_s16  }
   0xe   :  { %s1734_s19 = smov [#allocation2]   ;;  %s1735_s21 = smov [#allocation7]  }
   0xf   :  { %s17_s20 = sshll.u32 %s1734_s19, 4  ;;  %s39_s22 = sshll.u32 %s1735_s21, 4  ;;  %s18_s20 = int_to_ptr.vmem [resolvable:$true] %s17_s20  ;;  %s40_s22 = int_to_ptr.vmem [resolvable:$true] %s39_s22 }
  0x10   :  { %s1673_s23 = scalar_lea.vmem %s18_s20, 64  ;;  %p1678_p6 = scmp.lt.s32.totalorder %s18_s20, %s18_s20 }
  0x11   :  { %p1674_p5 = scmp.ne.s32.totalorder %s18_s20, %s1673_s23  ;;  %p1679_p7 = scmp.lt.s32.totalorder %s1673_s23, %s1673_s23 }
  0x13   :  { %p1680_p8 = por %p1679_p7, %p1678_p6 }
  0x15   :  { %p1681_p9 = pnand %p1680_p8, %p1674_p5 }
  0x17   :  { %1684 = shalt.err (!%p1681_p9)
}
  0x18   :  { %20 = dma.hbm_to_vmem [thread:$0]  %s1954_s0, 64, %s18_s20, [#allocation3]  }
  0x19   :  { %s1693_s26 = scalar_lea.vmem %s40_s22, 96  ;;  %p1698_p11 = scmp.lt.s32.totalorder %s40_s22, %s40_s22 }
  0x1a   :  { %p1694_p10 = scmp.ne.s32.totalorder %s40_s22, %s1693_s26  ;;  %p1699_p12 = scmp.lt.s32.totalorder %s1693_s26, %s1693_s26 }
  0x1c   :  { %p1700_p13 = por %p1699_p12, %p1698_p11 }
  0x1e   :  { %p1701_p0 = pnand %p1700_p13, %p1694_p10 }
  0x20   :  { %1704 = shalt.err (!%p1701_p0)
}
  0x21   :  { %42 = dma.hbm_to_vmem [thread:$0]  %s1956_s2, 96, %s40_s22, [#allocation6]  }
  0x22   :  { %1725 = dma.done.wait [#allocation3], 64  }
  0x23   :  { %1726 = vsyncadd [#allocation3], 4294967232 }
  0x24   :  { %1727 = dma.done.wait [#allocation6], 10336  }
  0x25   :  { %1728 = vsyncadd [#allocation6], 4294956960  ;;  %v1736_v0 = vmov 0.0   ;;  %vm1737_vm0 = vmmov 0   ;;  %v1533_v1 = vld [vmem:[#allocation5 + $0x230] ss:$40 sps:$4 sm:$0xff]  }
  0x26   :  { %1344 = vmatprep.subr.bf16.mxu0 %v1736_v0  ;;  %1360 = vmatprep.mubr.msk.bf16.mxu0 %vm1737_vm0, %v1736_v0  ;;  %v1534_v2 = vld [vmem:[#allocation5 + $0x1e0] ss:$40 sps:$4 sm:$0xff]   ;;  %v1535_v3 = vld [vmem:[#allocation5 + $0x190] ss:$40 sps:$4 sm:$0xff]   ;;  %v1541_v4 = vld [vmem:[#allocation5 + $0x234] ss:$40 sps:$4 sm:$0xff]  }
  0x27   :  { %1364 = vmatprep.subr.bf16.mxu1 %v1736_v0  ;;  %1380 = vmatprep.mubr.msk.bf16.mxu1 %vm1737_vm0, %v1736_v0  ;;  %v1536_v5 = vld [vmem:[#allocation5 + $0x140] ss:$40 sps:$4 sm:$0xff]   ;;  %v1542_v6 = vld [vmem:[#allocation5 + $0x1e4] ss:$40 sps:$4 sm:$0xff]   ;;  %v1537_v7 = vld [vmem:[#allocation5 + $0xf0] ss:$40 sps:$4 sm:$0xff]  }
  0x28   :  { %1345 = vmatpush3.bf16.msra.mxu0 %v1533_v1  ;;  %1365 = vmatpush3.bf16.msra.mxu1 %v1541_v4  ;;  %v1543_v8 = vld [vmem:[#allocation5 + $0x194] ss:$40 sps:$4 sm:$0xff]   ;;  %v1538_v9 = vld [vmem:[#allocation5 + $0xa0] ss:$40 sps:$4 sm:$0xff]   ;;  %v1544_v10 = vld [vmem:[#allocation5 + $0x144] ss:$40 sps:$4 sm:$0xff]  }
  0x29   :  { %1346 = vmatprep.subr.bf16.mxu0 %v1736_v0  ;;  %1366 = vmatprep.subr.bf16.mxu1 %v1736_v0  ;;  %v1539_v11 = vld [vmem:[#allocation5 + $0x50] ss:$40 sps:$4 sm:$0xff]   ;;  %v1545_v12 = vld [vmem:[#allocation5 + $0xf4] ss:$40 sps:$4 sm:$0xff]   ;;  %v1540_v13 = vld [vmem:[#allocation5] ss:$40 sps:$4 sm:$0xff]  }
  0x2a   :  { %v1546_v14 = vld [vmem:[#allocation5 + $0xa4] ss:$40 sps:$4 sm:$0xff]   ;;  %v1786_v15 = vld [vmem:[#allocation2] sm:$0xf]  ;;  %v1549_v18 = vld [vmem:[#allocation5 + $0x238] ss:$40 sps:$4 sm:$0xff]  }
  0x2b   :  { %v1547_v16 = vld [vmem:[#allocation5 + $0x54] ss:$40 sps:$4 sm:$0xff]   ;;  %v1548_v17 = vld [vmem:[#allocation5 + $0x4] ss:$40 sps:$4 sm:$0xff]   ;;  %v1555_v22 = vld [vmem:[#allocation5 + $0x1e8] ss:$40 sps:$4 sm:$0xff]  }
  0x2c   :  { %1347 = vmatpush3.bf16.msra.mxu0 %v1534_v2  ;;  %1367 = vmatpush3.bf16.msra.mxu1 %v1542_v6  ;;  %v1551_v19 = vld [vmem:[#allocation5 + $0x23c] ss:$40 sps:$4 sm:$0xff]   ;;  %v1557_v21 = vld [vmem:[#allocation5 + $0x1ec] ss:$40 sps:$4 sm:$0xff]   ;;  %v1561_v24 = vld [vmem:[#allocation5 + $0x198] ss:$40 sps:$4 sm:$0xff]  }
  0x2d   :  { %1348 = vmatprep.subr.bf16.mxu0 %v1736_v0  ;;  %1368 = vmatprep.subr.bf16.mxu1 %v1736_v0  ;;  %v1554_v20 = vld [vmem:[#allocation5 + $0x244] ss:$40 sps:$4 sm:$0xff]   ;;  %v1567_v26 = vld [vmem:[#allocation5 + $0x148] ss:$40 sps:$4 sm:$0xff]   ;;  %v1573_v28 = vld [vmem:[#allocation5 + $0xf8] ss:$40 sps:$4 sm:$0xff]  }
  0x2e   :  { %v1563_v23 = vld [vmem:[#allocation5 + $0x19c] ss:$40 sps:$4 sm:$0xff]   ;;  %v1569_v25 = vld [vmem:[#allocation5 + $0x14c] ss:$40 sps:$4 sm:$0xff]   ;;  %v1579_v30 = vld [vmem:[#allocation5 + $0xa8] ss:$40 sps:$4 sm:$0xff]  }
  0x2f   :  { %v1575_v27 = vld [vmem:[#allocation5 + $0xfc] ss:$40 sps:$4 sm:$0xff]   ;;  %v1581_v29 = vld [vmem:[#allocation5 + $0xac] ss:$40 sps:$4 sm:$0xff]   ;;  %v1585_v32 = vld [vmem:[#allocation5 + $0x58] ss:$40 sps:$4 sm:$0xff]  }
  0x30   :  { %1349 = vmatpush3.bf16.msra.mxu0 %v1535_v3  ;;  %1369 = vmatpush3.bf16.msra.mxu1 %v1543_v8  ;;  %v1587_v31 = vld [vmem:[#allocation5 + $0x5c] ss:$40 sps:$4 sm:$0xff]   ;;  %v1177_v33 = vld [vmem:[#allocation7] ss:$0 sm:$0xff]  ;;  %v1558_v43 = vld [vmem:[#allocation5 + $0x1f0] ss:$40 sps:$4 sm:$0xff]  }
  0x31   :  { %1350 = vmatprep.subr.bf16.mxu0 %v1736_v0  ;;  %1370 = vmatprep.subr.bf16.mxu1 %v1736_v0  ;;  %v1552_v39 = vld [vmem:[#allocation5 + $0x240] ss:$40 sps:$4 sm:$0xff]   ;;  %v1560_v41 = vld [vmem:[#allocation5 + $0x1f4] ss:$40 sps:$4 sm:$0xff]   ;;  %v1566_v44 = vld [vmem:[#allocation5 + $0x1a4] ss:$40 sps:$4 sm:$0xff]  }
  0x32   :  { %v1564_v45 = vld [vmem:[#allocation5 + $0x1a0] ss:$40 sps:$4 sm:$0xff]   ;;  %v1572_v46 = vld [vmem:[#allocation5 + $0x154] ss:$40 sps:$4 sm:$0xff]   ;;  %v1570_v47 = vld [vmem:[#allocation5 + $0x150] ss:$40 sps:$4 sm:$0xff]  }
  0x33   :  { %v1578_v48 = vld [vmem:[#allocation5 + $0x104] ss:$40 sps:$4 sm:$0xff]   ;;  %v1576_v49 = vld [vmem:[#allocation5 + $0x100] ss:$40 sps:$4 sm:$0xff]   ;;  %v1584_v50 = vld [vmem:[#allocation5 + $0xb4] ss:$40 sps:$4 sm:$0xff]  }
  0x34   :  { %1351 = vmatpush3.bf16.msra.mxu0 %v1536_v5  ;;  %1371 = vmatpush3.bf16.msra.mxu1 %v1544_v10  ;;  %v1582_v51 = vld [vmem:[#allocation5 + $0xb0] ss:$40 sps:$4 sm:$0xff]   ;;  %v1590_v52 = vld [vmem:[#allocation5 + $0x64] ss:$40 sps:$4 sm:$0xff]   ;;  %v1588_v53 = vld [vmem:[#allocation5 + $0x60] ss:$40 sps:$4 sm:$0xff]  }
  0x35   :  { %1352 = vmatprep.subr.bf16.mxu0 %v1736_v0  ;;  %1372 = vmatprep.subr.bf16.mxu1 %v1736_v0  ;;  %v1593_v54 = vld [vmem:[#allocation5 + $0xc] ss:$40 sps:$4 sm:$0xff]   ;;  %v1591_v56 = vld [vmem:[#allocation5 + $0x8] ss:$40 sps:$4 sm:$0xff]   ;;  %v1738_v58 = vmov 0   ;;  %s1739_s0 = smov [#allocation8]  }
  0x36   :  { %v1596_v55 = vld [vmem:[#allocation5 + $0x14] ss:$40 sps:$4 sm:$0xff]   ;;  %v1594_v57 = vld [vmem:[#allocation5 + $0x10] ss:$40 sps:$4 sm:$0xff]   ;;  %v1186_v59 = vld [vmem:[#allocation7 + $0x1] ss:$0 sm:$0xff] }
  0x37   :  { %v1798_v4 = vld [vmem:[#allocation5 + $0x248] ss:$40 sps:$4 sm:$0xff]   ;;  %v1801_v5 = vld [vmem:[#allocation5 + $0x24c] ss:$40 sps:$4 sm:$0xff]   ;;  %v1805_v6 = vld [vmem:[#allocation5 + $0x1f8] ss:$40 sps:$4 sm:$0xff]  }
  0x38   :  { %1353 = vmatpush3.bf16.msra.mxu0 %v1537_v7  ;;  %1373 = vmatpush3.bf16.msra.mxu1 %v1545_v12  ;;  %v1809_v7 = vld [vmem:[#allocation5 + $0x1fc] ss:$40 sps:$4 sm:$0xff]   ;;  %v1813_v8 = vld [vmem:[#allocation5 + $0x1a8] ss:$40 sps:$4 sm:$0xff]   ;;  %v1821_v10 = vld [vmem:[#allocation5 + $0x158] ss:$40 sps:$4 sm:$0xff]  }
  0x39   :  { %1354 = vmatprep.subr.bf16.mxu0 %v1736_v0  ;;  %1374 = vmatprep.subr.bf16.mxu1 %v1736_v0  ;;  %v1829_v12 = vld [vmem:[#allocation5 + $0x108] ss:$40 sps:$4 sm:$0xff]   ;;  %s1167_s2 = sshll.u32 %s1739_s0, 4  ;;  %s1168_s2 = int_to_ptr.vmem [resolvable:$true] %s1167_s2 }
  0x3a   :  { %s1705_s28 = scalar_lea.vmem %s1168_s2, 128  ;;  %p1710_p2 = scmp.lt.s32.totalorder %s1168_s2, %s1168_s2 }
  0x3b   :  { %p1706_p1 = scmp.ne.s32.totalorder %s1168_s2, %s1705_s28  ;;  %p1711_p3 = scmp.lt.s32.totalorder %s1705_s28, %s1705_s28 }
  0x3c   :  { %1355 = vmatpush3.bf16.msra.mxu0 %v1538_v9  ;;  %1375 = vmatpush3.bf16.msra.mxu1 %v1546_v14  ;;  %v1817_v9 = vld [vmem:[#allocation5 + $0x1ac] ss:$40 sps:$4 sm:$0xff]   ;;  %v1835_v14 = vld [vmem:[#allocation5 + $0xb8] ss:$40 sps:$4 sm:$0xff]  }
  0x3d   :  { %1356 = vmatprep.subr.bf16.mxu0 %v1736_v0  ;;  %1376 = vmatprep.subr.bf16.mxu1 %v1736_v0  ;;  %p1712_p4 = por %p1711_p3, %p1710_p2 }
  0x3f   :  { %p1713_p5 = pnand %p1712_p4, %p1706_p1 }
  0x40   :  { %1357 = vmatpush3.bf16.msra.mxu0 %v1539_v11  ;;  %1377 = vmatpush3.bf16.msra.mxu1 %v1547_v16  ;;  %v1825_v11 = vld [vmem:[#allocation5 + $0x15c] ss:$40 sps:$4 sm:$0xff]  }
  0x41   :  { %1358 = vmatprep.subr.bf16.mxu0 %v1736_v0  ;;  %1378 = vmatprep.subr.bf16.mxu1 %v1736_v0  ;;  %v1839_v16 = vld [vmem:[#allocation5 + $0xbc] ss:$40 sps:$4 sm:$0xff]  }
  0x44   :  { %1359 = vmatpush3.bf16.msra.mxu0 %v1540_v13  ;;  %1379 = vmatpush3.bf16.msra.mxu1 %v1548_v17  ;;  %v1833_v13 = vld [vmem:[#allocation5 + $0x10c] ss:$40 sps:$4 sm:$0xff]   ;;  %v1843_v17 = vld [vmem:[#allocation5 + $0x68] ss:$40 sps:$4 sm:$0xff]  }
  0x45   :  { %495 = vmatprep.subr.bf16.mxu0 %v1551_v19  ;;  %536 = vmatprep.subr.bf16.mxu1 %v1554_v20  ;;  %v1851_v19 = vld [vmem:[#allocation5 + $0x18] ss:$40 sps:$4 sm:$0xff]   ;;  %v1855_v20 = vld [vmem:[#allocation5 + $0x1c] ss:$40 sps:$4 sm:$0xff]  }
  0x47   :  { %1361 = vmatmul.mubr.bf16.vlgmr.msra.gmra.mxu0 %v1786_v15 }
  0x48   :  { %496 = vmatpush1.bf16.msra.mxu0 %v1549_v18  ;;  %527 = vmatprep.mubr.bf16.mxu0 %v1738_v58  ;;  %v1847_v18 = vld [vmem:[#allocation5 + $0x6c] ss:$40 sps:$4 sm:$0xff]  }
  0x49   :  { %497 = vmatprep.subr.bf16.mxu0 %v1557_v21  ;;  %v315_v21 = vlaneseq }
  0x4c   :  { %498 = vmatpush1.bf16.msra.mxu0 %v1555_v22  ;;  %v1862_v22 = vshrl.u32 %v315_v21, 7  ;;  %v1627_v21 = vld [vmem:[#allocation5 + $0x74] ss:$40 sps:$4 sm:$0xff]  }
  0x4d   :  { %499 = vmatprep.subr.bf16.mxu0 %v1563_v23 }
  0x4e   :  { %v317_v23 = vsub.s32 0, %v1862_v22 }
  0x50   :  { %500 = vmatpush1.bf16.msra.mxu0 %v1561_v24  ;;  %v1865_v24 = vld [vmem:[#allocation7 + $0x2] sm:$0xf] }
  0x51   :  { %501 = vmatprep.subr.bf16.mxu0 %v1569_v25  ;;  %v321_v25 = vsub.s32 1, %v1862_v22 }
  0x54   :  { %502 = vmatpush1.bf16.msra.mxu0 %v1567_v26  ;;  %v318_v26 = vrot.slane %v1865_v24, %v317_v23  ;;  %v1628_v23 = vld [vmem:[#allocation5 + $0x24] ss:$40 sps:$4 sm:$0xff]  }
  0x55   :  { %503 = vmatprep.subr.bf16.mxu0 %v1575_v27  ;;  %v322_v27 = vrot.slane %v1865_v24, %v321_v25 }
  0x58   :  { %504 = vmatpush1.bf16.msra.mxu0 %v1573_v28 }
  0x59   :  { %505 = vmatprep.subr.bf16.mxu0 %v1581_v29 }
  0x5c   :  { %506 = vmatpush1.bf16.msra.mxu0 %v1579_v30 }
  0x5d   :  { %507 = vmatprep.subr.bf16.mxu0 %v1587_v31 }
  0x60   :  { %508 = vmatpush1.bf16.msra.mxu0 %v1585_v32 }
  0x61   :  { %509 = vmatprep.subr.bf16.mxu0 %v1593_v54 }
  0x64   :  { %510 = vmatpush1.bf16.msra.mxu0 %v1591_v56 }
  0x65   :  { %1384 = vmatprep.subr.bf16.mxu0 %v1736_v0 }
 0x107   :  { %v210_v34 = vpop.f32.mrf.mxu0 }
 0x108   :  { %v211_v35 = vadd.f32 %v1177_v33, %v210_v34 }
 0x109   :  { %v1362_v36 = vpop.f32.mrf.mxu0 }
 0x10a   :  { %v216_v37 = vmax.f32 %v211_v35, 0.0 }
 0x10b   :  { %v213_v38 = vpop.f32.mrf.mxu0 }
 0x10c   :  { %v217_v40 = vpack.c.bf16 %v216_v37, %v216_v37 }
 0x10d   :  { %v1363_v42 = vpop.f32.mrf.mxu0 }
 0x10e   :  { %1381 = vmatmul.mubr.bf16.vlgmr.msra.gmra.mxu1 %v217_v40  ;;  %v325_v40 = vsub.s32 2, %v1862_v22 }
 0x10f   :  { %537 = vmatpush1.bf16.msra.mxu1 %v1552_v39  ;;  %568 = vmatprep.mubr.bf16.mxu1 %v1738_v58 }
 0x110   :  { %538 = vmatprep.subr.bf16.mxu1 %v1560_v41 }
 0x113   :  { %539 = vmatpush1.bf16.msra.mxu1 %v1558_v43  ;;  %v326_v43 = vrot.slane %v1865_v24, %v325_v40 }
 0x114   :  { %540 = vmatprep.subr.bf16.mxu1 %v1566_v44 }
 0x117   :  { %541 = vmatpush1.bf16.msra.mxu1 %v1564_v45 }
 0x118   :  { %542 = vmatprep.subr.bf16.mxu1 %v1572_v46 }
 0x11b   :  { %543 = vmatpush1.bf16.msra.mxu1 %v1570_v47 }
 0x11c   :  { %544 = vmatprep.subr.bf16.mxu1 %v1578_v48  ;;  %v54_v48 = vunpack.c.l.bf16 %v1786_v15  ;;  %v1614_v15 = vld [vmem:[#allocation5 + $0x200] ss:$40 sps:$4 sm:$0xff]  }
 0x11f   :  { %545 = vmatpush1.bf16.msra.mxu1 %v1576_v49  ;;  %v1875_v49 = vmul.f32 %v54_v48, %v54_v48 }
 0x120   :  { %546 = vmatprep.subr.bf16.mxu1 %v1584_v50 }
 0x123   :  { %547 = vmatpush1.bf16.msra.mxu1 %v1582_v51 }
 0x124   :  { %548 = vmatprep.subr.bf16.mxu1 %v1590_v52 }
 0x127   :  { %549 = vmatpush1.bf16.msra.mxu1 %v1588_v53 }
 0x128   :  { %550 = vmatprep.subr.bf16.mxu1 %v1596_v55 }
 0x12b   :  { %551 = vmatpush1.bf16.msra.mxu1 %v1594_v57  ;;  %v1613_v57 = vld [vmem:[#allocation5 + $0x250] ss:$40 sps:$4 sm:$0xff]  }
 0x12c   :  { %1404 = vmatprep.subr.bf16.mxu1 %v1736_v0 }
 0x1ce   :  { %v306_v60 = vpop.f32.mrf.mxu1 }
 0x1cf   :  { %v307_v61 = vadd.f32 %v1186_v59, %v306_v60  ;;  %v1615_v60 = vld [vmem:[#allocation5 + $0x1b0] ss:$40 sps:$4 sm:$0xff]  }
 0x1d0   :  { %v1382_v62 = vpop.f32.mrf.mxu1 }
 0x1d1   :  { %v312_v63 = vmax.f32 %v307_v61, 0.0  ;;  %v1616_v62 = vld [vmem:[#allocation5 + $0x160] ss:$40 sps:$4 sm:$0xff]  }
 0x1d2   :  { %v309_v1 = vpop.f32.mrf.mxu1 }
 0x1d3   :  { %v313_v2 = vpack.c.bf16 %v312_v63, %v312_v63  ;;  %v1617_v63 = vld [vmem:[#allocation5 + $0x110] ss:$40 sps:$4 sm:$0xff]   ;;  %v1618_v1 = vld [vmem:[#allocation5 + $0xc0] ss:$40 sps:$4 sm:$0xff]  }
 0x1d4   :  { %v1383_v3 = vpop.f32.mrf.mxu1 }
 0x1d5   :  { %528 = vmatmul.mubr.bf16.vlgmr.msra.gmra.mxu0 %v313_v2  ;;  %569 = vmatmul.mubr.bf16.vlgmr.msra.gmra.mxu1 %v313_v2  ;;  %v1619_v3 = vld [vmem:[#allocation5 + $0x70] ss:$40 sps:$4 sm:$0xff]  }
 0x1d6   :  { %1420 = vmatprep.mubr.msk.bf16.mxu1 %vm1737_vm0, %v1736_v0  ;;  %1400 = vmatprep.mubr.msk.bf16.mxu0 %vm1737_vm0, %v1736_v0 }
 0x1d7   :  { %1405 = vmatpush3.bf16.msra.mxu1 %v1798_v4  ;;  %1385 = vmatpush3.bf16.msra.mxu0 %v1801_v5 }
 0x1d8   :  { %1406 = vmatprep.subr.bf16.mxu1 %v1736_v0  ;;  %1386 = vmatprep.subr.bf16.mxu0 %v1736_v0 }
 0x1db   :  { %1407 = vmatpush3.bf16.msra.mxu1 %v1805_v6  ;;  %1387 = vmatpush3.bf16.msra.mxu0 %v1809_v7 }
 0x1dc   :  { %1408 = vmatprep.subr.bf16.mxu1 %v1736_v0  ;;  %1388 = vmatprep.subr.bf16.mxu0 %v1736_v0 }
 0x1df   :  { %1409 = vmatpush3.bf16.msra.mxu1 %v1813_v8  ;;  %1389 = vmatpush3.bf16.msra.mxu0 %v1817_v9 }
 0x1e0   :  { %1410 = vmatprep.subr.bf16.mxu1 %v1736_v0  ;;  %1390 = vmatprep.subr.bf16.mxu0 %v1736_v0 }
 0x1e3   :  { %1411 = vmatpush3.bf16.msra.mxu1 %v1821_v10  ;;  %1391 = vmatpush3.bf16.msra.mxu0 %v1825_v11 }
 0x1e4   :  { %1412 = vmatprep.subr.bf16.mxu1 %v1736_v0  ;;  %1392 = vmatprep.subr.bf16.mxu0 %v1736_v0 }
 0x1e7   :  { %1413 = vmatpush3.bf16.msra.mxu1 %v1829_v12  ;;  %1393 = vmatpush3.bf16.msra.mxu0 %v1833_v13 }
 0x1e8   :  { %1414 = vmatprep.subr.bf16.mxu1 %v1736_v0  ;;  %1394 = vmatprep.subr.bf16.mxu0 %v1736_v0 }
 0x1eb   :  { %1415 = vmatpush3.bf16.msra.mxu1 %v1835_v14  ;;  %1395 = vmatpush3.bf16.msra.mxu0 %v1839_v16 }
 0x1ec   :  { %1416 = vmatprep.subr.bf16.mxu1 %v1736_v0  ;;  %1396 = vmatprep.subr.bf16.mxu0 %v1736_v0 }
 0x1ef   :  { %1417 = vmatpush3.bf16.msra.mxu1 %v1843_v17  ;;  %1397 = vmatpush3.bf16.msra.mxu0 %v1847_v18 }
 0x1f0   :  { %1418 = vmatprep.subr.bf16.mxu1 %v1736_v0  ;;  %1398 = vmatprep.subr.bf16.mxu0 %v1736_v0 }
 0x1f3   :  { %1419 = vmatpush3.bf16.msra.mxu1 %v1851_v19  ;;  %1399 = vmatpush3.bf16.msra.mxu0 %v1855_v20 }
 0x1f4   :  { %1444 = vmatprep.subr.bf16.mxu1 %v1736_v0  ;;  %1424 = vmatprep.subr.bf16.mxu0 %v1736_v0 }
 0x295   :  { %v529_v28 = vpop.f32.mrf.mxu0  ;;  %v570_v29 = vpop.f32.mrf.mxu1 }
 0x296   :  { %v530_v30 = vadd.f32 %v529_v28, %v318_v26  ;;  %v571_v46 = vadd.f32 %v570_v29, %v326_v43 }
 0x297   :  { %v531_v31 = vpop.f32.mrf.mxu0  ;;  %v1870_v32 = vpop.f32.mrf.mxu1 }
 0x298   :  { %v1227_v33 = vmul.f32 -1.442695, %v530_v30  ;;  %v532_v34 = vadd.f32 %v531_v31, %v322_v27  ;;  %v1229_v47 = vmul.f32 -1.442695, %v571_v46 }
 0x299   :  { %v533_v35 = vpop.f32.mrf.mxu0  ;;  %v574_v36 = vpop.f32.mrf.mxu1 }
 0x29a   :  { %1629 = vpow2.f32 %v1227_v33  ;;  %v1228_v37 = vmul.f32 -1.442695, %v532_v34  ;;  %v329_v34 = vsub.s32 3, %v1862_v22 }
 0x29b   :  { %v534_v38 = vpop.f32.mrf.mxu0  ;;  %v575_v39 = vpop.f32.mrf.mxu1 }
 0x29c   :  { %1631 = vpow2.f32 %v1228_v37  ;;  %v330_v35 = vrot.slane %v1865_v24, %v329_v34 }
 0x29e   :  { %v573_v36 = vadd.f32 %v1870_v32, %v330_v35 }
 0x2a0   :  { %v1230_v37 = vmul.f32 -1.442695, %v573_v36 }
 0x2a7   :  { %v1630_v41 = vpop.eup %1629 }
 0x2a8   :  { %v589_v42 = vadd.f32 1.0, %v1630_v41 }
 0x2a9   :  { %v1632_v44 = vpop.eup %1631 }
 0x2aa   :  { %1633 = vrcp.f32 %v589_v42  ;;  %v590_v45 = vadd.f32 1.0, %v1632_v44 }
 0x2ac   :  { %1635 = vrcp.f32 %v590_v45 }
 0x2ad   :  { %1637 = vpow2.f32 %v1229_v47 }
 0x2b7   :  { %v1634_v50 = vpop.eup %1633 }
 0x2b8   :  { %v602_v51 = vmul.f32 %v1634_v50, %v54_v48  ;;  %v604_v52 = vmul.f32 %v1634_v50, %v1634_v50 }
 0x2b9   :  { %v1636_v53 = vpop.eup %1635 }
 0x2ba   :  { %v603_v54 = vpack.c.bf16 %v602_v51, %v602_v51  ;;  %v607_v55 = vmul.f32 %v1636_v53, %v54_v48  ;;  %v1878_v56 = vmul.f32 %v604_v52, %v1875_v49  ;;  %v1638_v59 = vpop.eup %1637  ;;  %v609_v2 = vmul.f32 %v1636_v53, %v1636_v53 }
 0x2bb   :  { %v591_v61 = vadd.f32 1.0, %v1638_v59 }
 0x2bc   :  { %1421 = vmatmul.mubr.bf16.vlgmr.msra.gmra.mxu1 %v603_v54  ;;  %v608_v58 = vpack.c.bf16 %v607_v55, %v607_v55 }
 0x2bd   :  { %1445 = vmatpush3.bf16.msra.mxu1 %v1801_v5  ;;  %1460 = vmatprep.mubr.msk.bf16.mxu1 %vm1737_vm0, %v1736_v0  ;;  %1639 = vrcp.f32 %v591_v61 }
 0x2be   :  { %1401 = vmatmul.mubr.bf16.vlgmr.msra.gmra.mxu0 %v608_v58  ;;  %1446 = vmatprep.subr.bf16.mxu1 %v1736_v0  ;;  %1641 = vpow2.f32 %v1230_v37 }
 0x2bf   :  { %1425 = vmatpush3.bf16.msra.mxu0 %v1613_v57  ;;  %1440 = vmatprep.mubr.msk.bf16.mxu0 %vm1737_vm0, %v1736_v0 }
 0x2c0   :  { %1426 = vmatprep.subr.bf16.mxu0 %v1736_v0 }
 0x2c1   :  { %1447 = vmatpush3.bf16.msra.mxu1 %v1809_v7  ;;  %v610_v7 = vmul.f32 %v609_v2, %v1875_v49 }
 0x2c2   :  { %1448 = vmatprep.subr.bf16.mxu1 %v1736_v0 }
 0x2c3   :  { %1427 = vmatpush3.bf16.msra.mxu0 %v1614_v15 }
 0x2c4   :  { %1428 = vmatprep.subr.bf16.mxu0 %v1736_v0 }
 0x2c5   :  { %1449 = vmatpush3.bf16.msra.mxu1 %v1817_v9  ;;  %v1620_v9 = vld [vmem:[#allocation5 + $0x20] ss:$40 sps:$4 sm:$0xff]  }
 0x2c6   :  { %1450 = vmatprep.subr.bf16.mxu1 %v1736_v0 }
 0x2c7   :  { %1429 = vmatpush3.bf16.msra.mxu0 %v1615_v60 }
 0x2c8   :  { %1430 = vmatprep.subr.bf16.mxu0 %v1736_v0 }
 0x2c9   :  { %1451 = vmatpush3.bf16.msra.mxu1 %v1825_v11 }
 0x2ca   :  { %1452 = vmatprep.subr.bf16.mxu1 %v1736_v0  ;;  %v1640_v5 = vpop.eup %1639 }
 0x2cb   :  { %1431 = vmatpush3.bf16.msra.mxu0 %v1616_v62  ;;  %v612_v11 = vmul.f32 %v1640_v5, %v54_v48  ;;  %v1642_v45 = vpop.eup %1641 }
 0x2cc   :  { %1432 = vmatprep.subr.bf16.mxu0 %v1736_v0  ;;  %v592_v46 = vadd.f32 1.0, %v1642_v45 }
 0x2cd   :  { %1453 = vmatpush3.bf16.msra.mxu1 %v1833_v13  ;;  %v611_v13 = vpack.c.bf16 %v610_v7, %v610_v7 }
 0x2ce   :  { %1454 = vmatprep.subr.bf16.mxu1 %v1736_v0  ;;  %1643 = vrcp.f32 %v592_v46 }
 0x2cf   :  { %1433 = vmatpush3.bf16.msra.mxu0 %v1617_v63 }
 0x2d0   :  { %1434 = vmatprep.subr.bf16.mxu0 %v1736_v0 }
 0x2d1   :  { %1455 = vmatpush3.bf16.msra.mxu1 %v1839_v16  ;;  %v613_v16 = vpack.c.bf16 %v612_v11, %v612_v11 }
 0x2d2   :  { %1456 = vmatprep.subr.bf16.mxu1 %v1736_v0 }
 0x2d3   :  { %1435 = vmatpush3.bf16.msra.mxu0 %v1618_v1 }
 0x2d4   :  { %1436 = vmatprep.subr.bf16.mxu0 %v1736_v0 }
 0x2d5   :  { %1457 = vmatpush3.bf16.msra.mxu1 %v1847_v18  ;;  %v1624_v18 = vld [vmem:[#allocation5 + $0x164] ss:$40 sps:$4 sm:$0xff]  }
 0x2d6   :  { %1458 = vmatprep.subr.bf16.mxu1 %v1736_v0 }
 0x2d7   :  { %1437 = vmatpush3.bf16.msra.mxu0 %v1619_v3 }
 0x2d8   :  { %1438 = vmatprep.subr.bf16.mxu0 %v1736_v0 }
 0x2d9   :  { %1459 = vmatpush3.bf16.msra.mxu1 %v1855_v20  ;;  %v1626_v20 = vld [vmem:[#allocation5 + $0xc4] ss:$40 sps:$4 sm:$0xff]  }
 0x2da   :  { %1484 = vmatprep.subr.bf16.mxu1 %v1736_v0 }
 0x2db   :  { %1439 = vmatpush3.bf16.msra.mxu0 %v1620_v9  ;;  %v1644_v32 = vpop.eup %1643 }
 0x2dc   :  { %1461 = vmatmul.mubr.bf16.vlgmr.msra.gmra.mxu1 %v611_v13  ;;  %1464 = vmatprep.subr.bf16.mxu0 %v1736_v0 }
 0x2dd   :  { %1485 = vmatpush3.bf16.msra.mxu1 %v1613_v57  ;;  %1500 = vmatprep.mubr.msk.bf16.mxu1 %vm1737_vm0, %v1736_v0  ;;  %v1051_v57 = vmul.f32 %v1644_v32, %v1644_v32 }
 0x2de   :  { %1441 = vmatmul.mubr.bf16.vlgmr.msra.gmra.mxu0 %v613_v16  ;;  %1486 = vmatprep.subr.bf16.mxu1 %v1736_v0 }
 0x2df   :  { %1465 = vmatpush3.bf16.msra.mxu0 %v1798_v4  ;;  %1480 = vmatprep.mubr.msk.bf16.mxu0 %vm1737_vm0, %v1736_v0  ;;  %v614_v4 = vmul.f32 %v1640_v5, %v1640_v5 }
 0x2e0   :  { %1466 = vmatprep.subr.bf16.mxu0 %v1736_v0 }
 0x2e1   :  { %1487 = vmatpush3.bf16.msra.mxu1 %v1614_v15 }
 0x2e2   :  { %1488 = vmatprep.subr.bf16.mxu1 %v1736_v0 }
 0x2e3   :  { %1467 = vmatpush3.bf16.msra.mxu0 %v1805_v6  ;;  %v615_v6 = vmul.f32 %v614_v4, %v1875_v49 }
 0x2e4   :  { %1468 = vmatprep.subr.bf16.mxu0 %v1736_v0 }
 0x2e5   :  { %1489 = vmatpush3.bf16.msra.mxu1 %v1615_v60 }
 0x2e6   :  { %1490 = vmatprep.subr.bf16.mxu1 %v1736_v0 }
 0x2e7   :  { %1469 = vmatpush3.bf16.msra.mxu0 %v1813_v8  ;;  %v616_v8 = vpack.c.bf16 %v615_v6, %v615_v6 }
 0x2e8   :  { %1470 = vmatprep.subr.bf16.mxu0 %v1736_v0 }
 0x2e9   :  { %1491 = vmatpush3.bf16.msra.mxu1 %v1616_v62 }
 0x2ea   :  { %1492 = vmatprep.subr.bf16.mxu1 %v1736_v0 }
 0x2eb   :  { %1471 = vmatpush3.bf16.msra.mxu0 %v1821_v10  ;;  %v606_v10 = vpack.c.bf16 %v1878_v56, %v1878_v56 }
 0x2ec   :  { %1472 = vmatprep.subr.bf16.mxu0 %v1736_v0 }
 0x2ed   :  { %1493 = vmatpush3.bf16.msra.mxu1 %v1617_v63 }
 0x2ee   :  { %1494 = vmatprep.subr.bf16.mxu1 %v1736_v0 }
 0x2ef   :  { %1473 = vmatpush3.bf16.msra.mxu0 %v1829_v12  ;;  %v1621_v12 = vld [vmem:[#allocation5 + $0x254] ss:$40 sps:$4 sm:$0xff]  }
 0x2f0   :  { %1474 = vmatprep.subr.bf16.mxu0 %v1736_v0 }
 0x2f1   :  { %1495 = vmatpush3.bf16.msra.mxu1 %v1618_v1 }
 0x2f2   :  { %1496 = vmatprep.subr.bf16.mxu1 %v1736_v0 }
 0x2f3   :  { %1475 = vmatpush3.bf16.msra.mxu0 %v1835_v14  ;;  %v1622_v14 = vld [vmem:[#allocation5 + $0x204] ss:$40 sps:$4 sm:$0xff]  }
 0x2f4   :  { %1476 = vmatprep.subr.bf16.mxu0 %v1736_v0 }
 0x2f5   :  { %1497 = vmatpush3.bf16.msra.mxu1 %v1619_v3 }
 0x2f6   :  { %1498 = vmatprep.subr.bf16.mxu1 %v1736_v0 }
 0x2f7   :  { %1477 = vmatpush3.bf16.msra.mxu0 %v1843_v17  ;;  %v1623_v17 = vld [vmem:[#allocation5 + $0x1b4] ss:$40 sps:$4 sm:$0xff]  }
 0x2f8   :  { %1478 = vmatprep.subr.bf16.mxu0 %v1736_v0 }
 0x2f9   :  { %1499 = vmatpush3.bf16.msra.mxu1 %v1620_v9 }
 0x2fb   :  { %1479 = vmatpush3.bf16.msra.mxu0 %v1851_v19  ;;  %v1625_v19 = vld [vmem:[#allocation5 + $0x114] ss:$40 sps:$4 sm:$0xff]  }
 0x2fc   :  { %1501 = vmatmul.mubr.bf16.vlgmr.msra.gmra.mxu1 %v616_v8  ;;  %1504 = vmatprep.subr.bf16.mxu0 %v1736_v0 }
 0x2fe   :  { %1481 = vmatmul.mubr.bf16.vlgmr.msra.gmra.mxu0 %v606_v10 }
 0x2ff   :  { %1520 = vmatprep.mubr.msk.bf16.mxu0 %vm1737_vm0, %v1736_v0  ;;  %1505 = vmatpush3.bf16.msra.mxu0 %v1621_v12 }
 0x300   :  { %1506 = vmatprep.subr.bf16.mxu0 %v1736_v0 }
 0x303   :  { %1507 = vmatpush3.bf16.msra.mxu0 %v1622_v14 }
 0x304   :  { %1508 = vmatprep.subr.bf16.mxu0 %v1736_v0 }
 0x307   :  { %1509 = vmatpush3.bf16.msra.mxu0 %v1623_v17 }
 0x308   :  { %1510 = vmatprep.subr.bf16.mxu0 %v1736_v0 }
 0x30b   :  { %1511 = vmatpush3.bf16.msra.mxu0 %v1624_v18 }
 0x30c   :  { %1512 = vmatprep.subr.bf16.mxu0 %v1736_v0 }
 0x30f   :  { %1513 = vmatpush3.bf16.msra.mxu0 %v1625_v19 }
 0x310   :  { %1514 = vmatprep.subr.bf16.mxu0 %v1736_v0 }
 0x313   :  { %1515 = vmatpush3.bf16.msra.mxu0 %v1626_v20 }
 0x314   :  { %1516 = vmatprep.subr.bf16.mxu0 %v1736_v0 }
 0x317   :  { %1517 = vmatpush3.bf16.msra.mxu0 %v1627_v21 }
 0x318   :  { %1518 = vmatprep.subr.bf16.mxu0 %v1736_v0 }
 0x31b   :  { %1519 = vmatpush3.bf16.msra.mxu0 %v1628_v23 }
 0x37c   :  { %v835_v25 = vpop.f32.mrf.mxu1 }
 0x37e   :  { %v747_v26 = vpop.f32.mrf.mxu0  ;;  %v1422_v27 = vpop.f32.mrf.mxu1 }
 0x37f   :  { %v836_v47 = vadd.f32 %v835_v25, %v747_v26 }
 0x380   :  { %v1402_v28 = vpop.f32.mrf.mxu0  ;;  %v838_v29 = vpop.f32.mrf.mxu1 }
 0x382   :  { %v750_v30 = vpop.f32.mrf.mxu0  ;;  %v1423_v31 = vpop.f32.mrf.mxu1 }
 0x384   :  { %v1403_v33 = vpop.f32.mrf.mxu0 }
 0x39c   :  { %v964_v38 = vpop.f32.mrf.mxu1 }
 0x39e   :  { %v923_v39 = vpop.f32.mrf.mxu0  ;;  %v1462_v0 = vpop.f32.mrf.mxu1 }
 0x39f   :  { %v929_v22 = vadd.f32 %v923_v39, %v836_v47 }
 0x3a0   :  { %v1442_v40 = vpop.f32.mrf.mxu0  ;;  %v967_v41 = vpop.f32.mrf.mxu1 }
 0x3a1   :  { %v1052_v53 = vmul.f32 %v929_v22, %v929_v22 }
 0x3a2   :  { %v926_v42 = vpop.f32.mrf.mxu0  ;;  %v1463_v43 = vpop.f32.mrf.mxu1 }
 0x3a4   :  { %v1443_v44 = vpop.f32.mrf.mxu0 }
 0x3bc   :  { %v1044_v48 = vpop.f32.mrf.mxu1 }
 0x3be   :  { %v1004_v49 = vpop.f32.mrf.mxu0  ;;  %v1502_v24 = vpop.f32.mrf.mxu1 }
 0x3bf   :  { %v1005_v50 = vadd.f32 %v1004_v49, %v964_v38 }
 0x3c0   :  { %v1482_v51 = vpop.f32.mrf.mxu0  ;;  %v1047_v52 = vpop.f32.mrf.mxu1 }
 0x3c1   :  { %v1050_v54 = vadd.f32 %v1044_v48, %v1005_v50 }
 0x3c2   :  { %v1007_v55 = vpop.f32.mrf.mxu0  ;;  %v1503_v56 = vpop.f32.mrf.mxu1 }
 0x3c3   :  { %v1053_v58 = vsub.f32 %v1052_v53, %v1050_v54 }
 0x3c4   :  { %v1483_v15 = vpop.f32.mrf.mxu0 }
 0x3c5   :  { %v1054_v59 = vmul.f32 %v1053_v58, %v1051_v57 }
 0x3c7   :  { %v1055_v60 = vpack.c.bf16 %v1054_v59, %v1054_v59 }
 0x3c9   :  { %1521 = vmatmul.mubr.bf16.vlgmr.msra.gmra.mxu0 %v1055_v60 }
 0x489   :  { %v1154_v61 = vpop.f32.mrf.mxu0 }
 0x48a   :  { %1160 = vst [vmem:[#allocation8] sm:$0xff] %v1154_v61 }
 0x48b   :  { %v1522_v62 = vpop.f32.mrf.mxu0 }
 0x48c   :  { %1716 = shalt.err (!%p1713_p5)
}
 0x48d   :  { %1170 = dma.vmem_to_hbm [thread:$0]  %s1168_s2, 128, %s1957_s3, [#allocation4]   ;;  %v1157_v63 = vpop.f32.mrf.mxu0 }
 0x48f   :  { %v1523_v1 = vpop.f32.mrf.mxu0 }
 0x490   :  { %1729 = dma.done.wait [#allocation4], 128  }
 0x491   :  { %1730 = vsyncadd [#allocation4], 4294967168 }
 0x492   :  { %1174 = vsyncpa [#allocation3], 1 }
 0x493   :  { %1175 = vsyncpa [#allocation6], 1 }
 0x494   :  { %1176 = vsyncpa [#allocation4], 1 }

</bundles_post_ra>
